<compile_context>
chip_gen: v6e
topology: v6e:2x2x1
jax: 0.10.0
libtpu: 0.0.40
codegen_flags: <defaults>
</compile_context>

<pallas_src>
import jax
import jax.numpy as jnp
from jax.experimental import pallas as pl
from jax.experimental.pallas import tpu as pltpu


def _linear_softmax_kernel(x_ref, w_ref, o_ref):
    # x_ref: (TB, 1)   w_ref: (1, OUT)   o_ref: (TB, OUT)
    x = x_ref[...].astype(jnp.float32)                 # (TB, 1)
    w = w_ref[...].astype(jnp.float32)                 # (1, OUT), lane-dense

    # Row max of y = x*w without an XLU pass over the (TB, OUT) tile:
    #   max_j x*w_j = x*max(w) if x >= 0 else x*min(w)
    w_max = jnp.max(w, axis=-1, keepdims=True)          # (1, 1)
    w_min = jnp.min(w, axis=-1, keepdims=True)          # (1, 1)
    m = jnp.where(x >= 0.0, x * w_max, x * w_min)       # (TB, 1)

    # Linear (no bias, K=1) is an outer product: VPU broadcast multiply.
    e = jnp.exp(x * w - m)                               # (TB, OUT), exponents <= 0
    denom = jnp.sum(e, axis=-1, keepdims=True)           # (TB, 1)
    inv = pl.reciprocal(denom, approx=False)             # exact; one per row
    o_ref[...] = (e * inv).astype(o_ref.dtype)


def _round_down_mult(v: int, m: int) -> int:
    return (v // m) * m


def linear_softmax(x: jax.Array, weight: jax.Array, *, out_dtype=None) -> jax.Array:
    """x: (B, 1), weight: (output_len, 1) -> softmax(x @ weight.T, axis=-1)."""
    B, K = x.shape
    assert K == 1, "nn.Linear(1, output_len) expects in_features == 1"
    out_len = weight.shape[0]
    out_dtype = x.dtype if out_dtype is None else out_dtype

    # Lane-dense (1, OUT) weight row (wrapper-side layout plumbing is free).
    w_row = weight.reshape(1, out_len)

    # --- VMEM budget & tile sizing (per generation) ---
    try:
        vmem_cap = pltpu.get_tpu_info().vmem_capacity_bytes
    except Exception:
        vmem_cap = 128 * 1024 * 1024
    # 3/4 of physical with a 96 MiB cap: 96 MiB on v5e/v6e (128 MiB), 48 MiB on v7x (64 MiB).
    vmem_limit = int(min((vmem_cap * 3) // 4, 96 * 1024 * 1024))

    # ~4 * TB * OUT * 4B live per grid step (2 output buffers + exp temp + headroom).
    tb = vmem_limit // (16 * out_len)
    tb = max(8, min(_round_down_mult(tb, 8), 1024))
    b_ceil8 = ((B + 7) // 8) * 8
    tb = min(tb, b_ceil8)
    # v7x megacore: keep >= 2 grid blocks when the batch allows it.
    if -(-b_ceil8 // tb) < 2 and b_ceil8 >= 16:
        tb = max(8, _round_down_mult(b_ceil8 // 2, 8))

    # Pad batch to a multiple of tb: no ragged last block, no exp() on garbage rows.
    num_blocks = -(-B // tb)
    Bp = num_blocks * tb
    x_p = x if Bp == B else jnp.pad(x, ((0, Bp - B), (0, 0)))

    cost = pl.CostEstimate(
        flops=5 * Bp * out_len,
        transcendentals=Bp * out_len,
        bytes_accessed=int(
            x_p.size * x_p.dtype.itemsize
            + w_row.size * w_row.dtype.itemsize
            + Bp * out_len * jnp.dtype(out_dtype).itemsize
        ),
    )

    out = pl.pallas_call(
        _linear_softmax_kernel,
        out_shape=jax.ShapeDtypeStruct((Bp, out_len), out_dtype),
        grid_spec=pltpu.PrefetchScalarGridSpec(
            num_scalar_prefetch=0,
            grid=(num_blocks,),
            in_specs=[
                # x: (TB, 1) column block, marches down the batch axis.
                pl.BlockSpec((tb, 1), lambda i: (i, 0)),
                # weight row: resident across all grid steps.
                pl.BlockSpec((1, out_len), lambda i: (0, 0)),
            ],
            out_specs=pl.BlockSpec((tb, out_len), lambda i: (i, 0)),
        ),
        compiler_params=pltpu.CompilerParams(
            dimension_semantics=("parallel",),  # rows independent -> TC sharding on v7x
            vmem_limit_bytes=vmem_limit,
        ),
        cost_estimate=cost,
    )(x_p, w_row)

    return out[:B] if Bp != B else out


if __name__ == "__main__":
    key = jax.random.PRNGKey(0)
    k_x, k_w, k_x2, k_w2 = jax.random.split(key, 4)

    # --- Primary check: lane-dense output (OUT multiple of 128) ---
    batch, output_len = 8, 128
    x = jax.random.normal(k_x, (batch, 1), dtype=jnp.float32)
    # Mimic nn.Linear(1, output_len, bias=False) init: uniform(-1, 1) since in_features=1.
    weight = jax.random.uniform(
        k_w, (output_len, 1), dtype=jnp.float32, minval=-1.0, maxval=1.0
    )
    out = jax.block_until_ready(linear_softmax(x, weight))
    ref = jax.nn.softmax(x @ weight.T, axis=-1)
    assert out.shape == (batch, output_len)
    assert jnp.allclose(out, ref, atol=1e-5, rtol=1e-4)
    assert jnp.allclose(jnp.sum(out, axis=-1), 1.0, atol=1e-5)

    # --- Guard: OUT not a multiple of 128 and B not a multiple of the tile ---
    # (exercises lane-masked reductions/stores and the batch-padding path)
    batch2, output_len2 = 10, 32
    x2 = jax.random.normal(k_x2, (batch2, 1), dtype=jnp.float32)
    weight2 = jax.random.uniform(
        k_w2, (output_len2, 1), dtype=jnp.float32, minval=-1.0, maxval=1.0
    )
    out2 = jax.block_until_ready(linear_softmax(x2, weight2))
    ref2 = jax.nn.softmax(x2 @ weight2.T, axis=-1)
    assert out2.shape == (batch2, output_len2)
    assert jnp.allclose(out2, ref2, atol=1e-5, rtol=1e-4)
    assert jnp.allclose(jnp.sum(out2, axis=-1), 1.0, atol=1e-5)

    print("KERNEL_OK")
</pallas_src>

<mosaic_0001>
module attributes {stable_mosaic.version = 11 : i64} {
  func.func @_linear_softmax_kernel(%arg0: i32, %arg1: memref<8x1xf32, #tpu.memory_space<vmem>>, %arg2: memref<1x128xf32, #tpu.memory_space<vmem>>, %arg3: memref<8x128xf32, #tpu.memory_space<vmem>>) attributes {dimension_semantics = [#tpu.dimension_semantics<parallel>], iteration_bounds = array<i64: 1>, scalar_prefetch = 0 : i64, scratch_operands = 0 : i64, tpu.core_type = #tpu.core_type<tc>, window_params = [{transform_indices = @transform_0, window_bounds = array<i64: 8, 1>}, {pipeline_mode = #tpu.pipeline_mode<synchronous>, transform_indices = @transform_1, window_bounds = array<i64: 1, 128>}, {transform_indices = @transform_2, window_bounds = array<i64: 8, 128>}]} {
    %c0 = arith.constant 0 : index
    %c0_0 = arith.constant 0 : index
    %0 = vector.load %arg1[%c0, %c0_0] : memref<8x1xf32, #tpu.memory_space<vmem>>, vector<8x1xf32>
    %c0_1 = arith.constant 0 : index
    %c0_2 = arith.constant 0 : index
    %1 = vector.load %arg2[%c0_1, %c0_2] : memref<1x128xf32, #tpu.memory_space<vmem>>, vector<1x128xf32>
    %cst = arith.constant dense<0xFF800000> : vector<1xf32>
    %2 = vector.multi_reduction <maximumf>, %1, %cst [1] : vector<1x128xf32> to vector<1xf32>
    %3 = vector.shape_cast %2 : vector<1xf32> to vector<1x1xf32>
    %cst_3 = arith.constant dense<0x7F800000> : vector<1xf32>
    %4 = vector.multi_reduction <minimumf>, %1, %cst_3 [1] : vector<1x128xf32> to vector<1xf32>
    %5 = vector.shape_cast %4 : vector<1xf32> to vector<1x1xf32>
    %cst_4 = arith.constant 0.000000e+00 : f32
    %6 = vector.broadcast %cst_4 : f32 to vector<8x1xf32>
    %7 = arith.cmpf oge, %0, %6 : vector<8x1xf32>
    %8 = vector.broadcast %3 : vector<1x1xf32> to vector<8x1xf32>
    %9 = arith.mulf %0, %8 : vector<8x1xf32>
    %10 = vector.broadcast %5 : vector<1x1xf32> to vector<8x1xf32>
    %11 = arith.mulf %0, %10 : vector<8x1xf32>
    %12 = arith.select %7, %9, %11 : vector<8x1xi1>, vector<8x1xf32>
    %13 = vector.broadcast %0 : vector<8x1xf32> to vector<8x128xf32>
    %14 = vector.broadcast %1 : vector<1x128xf32> to vector<8x128xf32>
    %15 = arith.mulf %13, %14 : vector<8x128xf32>
    %16 = vector.broadcast %12 : vector<8x1xf32> to vector<8x128xf32>
    %17 = arith.subf %15, %16 : vector<8x128xf32>
    %18 = math.exp %17 : vector<8x128xf32>
    %cst_5 = arith.constant dense<0.000000e+00> : vector<8xf32>
    %19 = vector.multi_reduction <add>, %18, %cst_5 [1] : vector<8x128xf32> to vector<8xf32>
    %20 = vector.shape_cast %19 : vector<8xf32> to vector<8x1xf32>
    %21 = tpu.reciprocal %20 : vector<8x1xf32> -> vector<8x1xf32>
    %22 = vector.broadcast %21 : vector<8x1xf32> to vector<8x128xf32>
    %23 = arith.mulf %18, %22 : vector<8x128xf32>
    %c0_6 = arith.constant 0 : index
    %c0_7 = arith.constant 0 : index
    %24 = vector.load %arg3[%c0_6, %c0_7] : memref<8x128xf32, #tpu.memory_space<vmem>>, vector<8x128xf32>
    tpu.vector_store %arg3[%c0_6, %c0_7], %23 {strides = array<i32>} : memref<8x128xf32, #tpu.memory_space<vmem>>, vector<8x128xf32>,
    return
  }
  func.func @transform_0(%arg0: i32) -> (i32, i32) {
    %c0_i32 = arith.constant 0 : i32
    %c0_i32_0 = arith.constant 0 : i32
    return %arg0, %c0_i32 : i32, i32
  }
  func.func @transform_1(%arg0: i32) -> (i32, i32) {
    %c0_i32 = arith.constant 0 : i32
    %c0_i32_0 = arith.constant 0 : i32
    %c0_i32_1 = arith.constant 0 : i32
    return %c0_i32, %c0_i32_0 : i32, i32
  }
  func.func @transform_2(%arg0: i32) -> (i32, i32) {
    %c0_i32 = arith.constant 0 : i32
    %c0_i32_0 = arith.constant 0 : i32
    return %arg0, %c0_i32 : i32, i32
  }
}

</mosaic_0001>

<bundles_post_ra>
// kernel: tpu_custom_call.1
= control target key start
LH: loop header
LB: loop body
LE: loop exit
PB: predicated region body
PF: predicated region fallthrough
CT: control target
= control target key end

     0   :  { %vm14_vm0 = vcmask 1040384   ;;  %s128_s0 = inlined_call_operand.vmem [shape: f32[8,1], index: 0, kind: input, shape index: {}]   ;;  %s129_s1 = inlined_call_operand.vmem [shape: f32[1,128], index: 1, kind: input, shape index: {}]   ;;  %s130_s2 = inlined_call_operand.hbm [shape: f32[8,128], index: 2, kind: output, shape index: {}]  }
   0x1   :  { %v13_v0 = vld [vmem:[%s129_s1] sm:$0x1] }
   0x2   :  { %7 = vsyncpa [#allocation3], 0  ;;  %v15_v1 = vsel %vm14_vm0, %v13_v0, -inf  ;;  %v18_v2 = vsel %vm14_vm0, %v13_v0, inf  ;;  %v12_v3 = vld [vmem:[%s128_s0] sm:$0xff]  ;;  %v102_v4 = vmov 0   ;;  %v22_v5 = vlaneseq }
   0x3   :  { %16 = vmax.xlane.f32.xlu0 %v15_v1  ;;  %74 = vset.pattern.permute.xlu1 %v102_v4  ;;  %vm21_vm1 = vcmp.ge.f32.partialorder %v12_v3, 0.0  ;;  %s103_s0 = smov [#allocation2]  }
   0x4   :  { %75 = vset.pattern.permute.xlu0 %v102_v4  ;;  %35 = vperm.xlu1 %74, %v12_v3   ;;  %v23_v6 = vshrl.u32 %v22_v5, 7  ;;  %s64_s1 = sshll.u32 %s103_s0, 4  ;;  %s65_s1 = int_to_ptr.vmem [resolvable:$true] %s64_s1 }
   0x5   :  { %s80_s13 = scalar_lea.vmem %s65_s1, 128  ;;  %p85_p1 = scmp.lt.s32.totalorder %s65_s1, %s65_s1 }
   0x6   :  { %v24_v7 = vsub.s32 0, %v23_v6  ;;  %p81_p0 = scmp.ne.s32.totalorder %s65_s1, %s80_s13  ;;  %p86_p2 = scmp.lt.s32.totalorder %s80_s13, %s80_s13 }
   0x7   :  { %19 = vmin.xlane.f32.xlu0 %v18_v2 }
   0x8   :  { %v42_v16 = vrot.slane %v13_v0, %v24_v7  ;;  %p87_p3 = por %p86_p2, %p85_p1 }
   0xa   :  { %p88_p4 = pnand %p87_p3, %p81_p0 }
  0x7f   :  { %v36_v15 = vpop.permute.xlu1 %35 }
  0x80   :  { %v44_v17 = vmul.f32 %v42_v16, %v36_v15 }
  0x8c   :  { %v17_v8 = vpop.xlane.xlu0 %16 }
  0x8d   :  { %v25_v9 = vrot.slane %v17_v8, %v24_v7 }
  0x8f   :  { %v26_v12 = vmul.f32 %v25_v9, %v12_v3 }
  0x90   :  { %v20_v10 = vpop.xlane.xlu0 %19 }
  0x91   :  { %v30_v11 = vrot.slane %v20_v10, %v24_v7 }
  0x93   :  { %v31_v13 = vmul.f32 %v30_v11, %v12_v3 }
  0x95   :  { %v32_v14 = vsel %vm21_vm1, %v26_v12, %v31_v13 }
  0x96   :  { %47 = vperm.xlu1 %74, %v32_v14  }
 0x111   :  { %v48_v18 = vpop.permute.xlu1 %47 }
 0x112   :  { %v50_v19 = vsub.f32 %v44_v17, %v48_v18 }
 0x114   :  { %v51_v20 = vmul.f32 1.442695, %v50_v19 }
 0x116   :  { %76 = vpow2.f32 %v51_v20 }
 0x123   :  { %v77_v21 = vpop.eup %76 }
 0x124   :  { %53 = vadd.xlane.f32.xlu0 %v77_v21 }
 0x1ad   :  { %v54_v22 = vpop.xlane.xlu0 %53 }
 0x1ae   :  { %78 = vrcp.f32 %v54_v22 }
 0x1bb   :  { %v79_v23 = vpop.eup %78 }
 0x1bc   :  { %v56_v24 = vmul.f32 %v79_v23, %v77_v21 }
 0x1be   :  { %57 = vst [vmem:[#allocation2] sm:$0xff] %v56_v24 }
 0x1bf   :  { %91 = shalt.err (!%p88_p4)
}
 0x1c0   :  { %67 = dma.vmem_to_hbm [thread:$0]  %s65_s1, 128, %s130_s2, [#allocation3]  }
 0x1c1   :  { %100 = dma.done.wait [#allocation3], 128  }
 0x1c2   :  { %101 = vsyncadd [#allocation3], 4294967168 }
 0x1c3   :  { %71 = vsyncpa [#allocation3], 1 }

</bundles_post_ra>
